<compile_context>
chip_gen: v6e
topology: v6e:2x2x1
jax: 0.10.0
libtpu: 0.0.40
codegen_flags: <defaults>
</compile_context>

<pallas_src>
import functools
import math

import jax
import jax.numpy as jnp
from jax.experimental import pallas as pl
from jax.experimental.pallas import tpu as pltpu


def convlora_kernel(x_ref, ga_ref, bd_ref, o_ref, xpad_ref, *, H, W, K, Cin, R, p):
    """One batch element (whole image) per grid step.

    x_ref    : (H, W*Cin)        bf16  image in lane-dense (row, width*chan) layout
    ga_ref   : (K, W*Cin, W*R)   bf16  banded lora_A weight (one band per kh tap)
    bd_ref   : (W*R, W*Cout)     bf16  block-diagonal lora_B weight (scaling folded)
    o_ref    : (H, W*Cout)       bf16  lane-dense output
    xpad_ref : (H+2p, W*Cin)     f32   VMEM scratch: image with p zero rows top/bot
                                       (SAME padding along H fused here; SAME padding
                                        along W is absorbed into ga's band structure)
    """
    # Fused SAME padding along H: zero the tiny halo scratch, copy the interior.
    xpad_ref[...] = jnp.zeros_like(xpad_ref)
    xpad_ref[p:p + H, :] = x_ref[...].astype(jnp.float32)

    # Stage 1 (lora_A, KxK conv): K row-shifted matmuls against the banded
    # weight.  The row shift is a pure sublane offset; the kw/ci tap structure
    # lives inside ga's band, so there are no lane rolls, slices-of-slices,
    # concatenates, or reshapes in the kernel.
    acc = jnp.zeros((H, W * R), jnp.float32)
    for kh in range(K):
        lhs = xpad_ref[kh:kh + H, :].astype(jnp.bfloat16)   # exact (values are bf16)
        acc += jnp.dot(lhs, ga_ref[kh], preferred_element_type=jnp.float32)

    # Stage 2 (lora_B 1x1 conv, * alpha/rank): one block-diagonal matmul.
    out = jnp.dot(acc.astype(jnp.bfloat16), bd_ref[...],
                  preferred_element_type=jnp.float32)

    # TODO(synk): training-mode dropout (pltpu.prng_random_bits mask) not
    #             implemented; eval-mode dropout is the identity.
    o_ref[...] = out.astype(o_ref.dtype)


def _build_banded_weights(w_a, w_b, *, W, scaling):
    """Banded lora_A / block-diagonal lora_B matrices for the 2-D row layout.

    ga[kh, (w+kw-p)*Cin+ci, w*R+r] = w_a[r, ci, kh, kw]   (taps with w+kw-p
        outside [0, W) are simply absent -> implicit SAME padding along W)
    bd[w*R+r, w*Cout+c]            = w_b[c, r, 0, 0] * scaling
    """
    R, Cin, K, _ = w_a.shape
    Cout = w_b.shape[0]
    p = K // 2

    wa_hwio = jnp.transpose(w_a, (2, 3, 1, 0))              # (K, K, Cin, R)
    wb_rc = jnp.transpose(w_b[:, :, 0, 0], (1, 0))          # (R, Cout)

    ga_per_kh = []
    for kh in range(K):
        g_kh = jnp.zeros((W * Cin, W * R), w_a.dtype)
        for kw in range(K):
            # E[w', w] = 1  iff  w' = w + kw - p   (shifted identity)
            shift_eye = jnp.eye(W, W, k=p - kw, dtype=w_a.dtype)
            g_kh = g_kh + jnp.kron(shift_eye, wa_hwio[kh, kw])
        ga_per_kh.append(g_kh)
    ga = jnp.stack(ga_per_kh, axis=0).astype(jnp.bfloat16)     # (K, W*Cin, W*R)

    eye_w = jnp.eye(W, dtype=w_a.dtype)
    bd = jnp.kron(eye_w, wb_rc * scaling).astype(jnp.bfloat16)  # (W*R, W*Cout)
    return ga, bd


def conv_lora_forward(x_nchw, w_a, w_b, *, alpha=1.0):
    """ConvLoRA forward.

    x_nchw: (B, Cin, H, W)   PyTorch NCHW input
    w_a   : (R, Cin, K, K)   Conv2d weight of lora_A
    w_b   : (Cout, R, 1, 1)  Conv2d weight of lora_B
    returns (B, Cout, H, W)
    """
    B, Cin, H, W = x_nchw.shape
    R, _, K, _ = w_a.shape
    Cout = w_b.shape[0]
    assert K % 2 == 1, "padding=K//2 only matches PyTorch output size for odd K"
    p = K // 2
    Hp = H + 2 * p
    scaling = alpha / R

    ga, bd = _build_banded_weights(w_a, w_b, W=W, scaling=scaling)

    # Only wrapper pass over x: NCHW -> lane-dense (B, H, W*Cin) bf16.
    # (No jnp.pad and no overlapping-tile stack -> no extra HBM round trips.)
    x2d = jnp.transpose(x_nchw, (0, 2, 3, 1)).reshape(B, H, W * Cin)
    x2d = x2d.astype(jnp.bfloat16)

    kernel = functools.partial(convlora_kernel, H=H, W=W, K=K, Cin=Cin, R=R, p=p)

    flops = 2 * B * H * (K * (W * Cin) * (W * R) + (W * R) * (W * Cout))
    bytes_accessed = 2 * (x2d.size + ga.size + bd.size + B * H * W * Cout)

    out_lane = pl.pallas_call(
        kernel,
        out_shape=jax.ShapeDtypeStruct((B, H, W * Cout), jnp.bfloat16),
        grid=(B,),
        in_specs=[
            pl.BlockSpec((None, H, W * Cin), lambda b: (b, 0, 0)),   # batch squeezed
            pl.BlockSpec((K, W * Cin, W * R), lambda b: (0, 0, 0)),  # full ga
            pl.BlockSpec((W * R, W * Cout), lambda b: (0, 0)),       # full bd
        ],
        out_specs=pl.BlockSpec((None, H, W * Cout), lambda b: (b, 0, 0)),
        scratch_shapes=[pltpu.VMEM((Hp, W * Cin), jnp.float32)],
        compiler_params=pltpu.CompilerParams(
            dimension_semantics=("parallel",)),
        cost_estimate=pl.CostEstimate(
            flops=flops, transcendentals=0, bytes_accessed=bytes_accessed),
    )(x2d, ga, bd)

    out_nhwc = out_lane.reshape(B, H, W, Cout)
    return jnp.transpose(out_nhwc, (0, 3, 1, 2)).astype(x_nchw.dtype)


def _reference(x_nchw, w_a, w_b, *, alpha=1.0):
    """Pure-JAX f32 reference (two lax convs, matching the PyTorch module)."""
    R = w_a.shape[0]
    scaling = alpha / R
    x_nhwc = jnp.transpose(x_nchw, (0, 2, 3, 1))
    wa = jnp.transpose(w_a, (2, 3, 1, 0))
    wb = jnp.transpose(w_b[:, :, 0, 0], (1, 0))
    a = jax.lax.conv_general_dilated(
        x_nhwc, wa, window_strides=(1, 1), padding="SAME",
        dimension_numbers=("NHWC", "HWIO", "NHWC"))
    out = jnp.einsum("bhwr,rc->bhwc", a, wb) * scaling
    return jnp.transpose(out, (0, 3, 1, 2))


if __name__ == "__main__":
    # Small synthetic config consistent with the module defaults.
    B, Cin, H, W = 2, 4, 16, 16
    Cout, K, R = 8, 3, 4
    alpha = 1.0

    key = jax.random.PRNGKey(0)
    kx, ka, kb = jax.random.split(key, 3)

    x = jax.random.normal(kx, (B, Cin, H, W), dtype=jnp.float32)

    # lora_A: kaiming_uniform_(a=sqrt(5)) -> bound = sqrt(1 / fan_in)
    fan_in = Cin * K * K
    bound_a = math.sqrt(1.0 / fan_in)
    w_a = jax.random.uniform(ka, (R, Cin, K, K), minval=-bound_a, maxval=bound_a,
                             dtype=jnp.float32)
    # NOTE: the module initializes lora_B to zeros (output trivially 0); use
    # small random values so the kernel is actually exercised.
    w_b = 0.02 * jax.random.normal(kb, (Cout, R, 1, 1), dtype=jnp.float32)

    out = conv_lora_forward(x, w_a, w_b, alpha=alpha)
    out = jax.block_until_ready(out)

    ref = _reference(x, w_a, w_b, alpha=alpha)
    assert out.shape == (B, Cout, H, W), out.shape
    # Tolerance accounts for bf16 input/weight/output quantization in-kernel.
    assert jnp.allclose(out, ref, atol=1e-3, rtol=1e-2), "mismatch vs reference"

    print("KERNEL_OK")
</pallas_src>

<mosaic_0001>
module attributes {stable_mosaic.version = 11 : i64} {
  func.func @convlora_kernel(%arg0: i32, %arg1: memref<1x16x64xbf16, #tpu.memory_space<vmem>>, %arg2: memref<3x64x64xbf16, #tpu.memory_space<vmem>>, %arg3: memref<64x128xbf16, #tpu.memory_space<vmem>>, %arg4: memref<1x16x128xbf16, #tpu.memory_space<vmem>>, %arg5: memref<18x64xf32, #tpu.memory_space<vmem>>) attributes {dimension_semantics = [#tpu.dimension_semantics<parallel>], iteration_bounds = array<i64: 2>, scalar_prefetch = 0 : i64, scratch_operands = 1 : i64, tpu.core_type = #tpu.core_type<tc>, window_params = [{transform_indices = @transform_0, window_bounds = array<i64: 1, 16, 64>}, {pipeline_mode = #tpu.pipeline_mode<synchronous>, transform_indices = @transform_1, window_bounds = array<i64: 3, 64, 64>}, {pipeline_mode = #tpu.pipeline_mode<synchronous>, transform_indices = @transform_2, window_bounds = array<i64: 64, 128>}, {transform_indices = @transform_3, window_bounds = array<i64: 1, 16, 128>}]} {
    %cst = arith.constant 0.000000e+00 : f32
    %0 = vector.broadcast %cst : f32 to vector<18x64xf32>
    %c0 = arith.constant 0 : index
    %c0_0 = arith.constant 0 : index
    %1 = vector.load %arg5[%c0, %c0_0] : memref<18x64xf32, #tpu.memory_space<vmem>>, vector<18x64xf32>
    tpu.vector_store %arg5[%c0, %c0_0], %0 {strides = array<i32>} : memref<18x64xf32, #tpu.memory_space<vmem>>, vector<18x64xf32>,
    %c0_1 = arith.constant 0 : index
    %c0_2 = arith.constant 0 : index
    %c0_3 = arith.constant 0 : index
    %2 = vector.load %arg1[%c0_1, %c0_2, %c0_3] : memref<1x16x64xbf16, #tpu.memory_space<vmem>>, vector<1x16x64xbf16>
    %3 = vector.shape_cast %2 : vector<1x16x64xbf16> to vector<16x64xbf16>
    %4 = arith.extf %3 : vector<16x64xbf16> to vector<16x64xf32>
    %c1 = arith.constant 1 : index
    %c0_4 = arith.constant 0 : index
    %5 = vector.load %arg5[%c1, %c0_4] : memref<18x64xf32, #tpu.memory_space<vmem>>, vector<16x64xf32>
    tpu.vector_store %arg5[%c1, %c0_4], %4 {strides = array<i32>} : memref<18x64xf32, #tpu.memory_space<vmem>>, vector<16x64xf32>,
    %cst_5 = arith.constant 0.000000e+00 : f32
    %6 = vector.broadcast %cst_5 : f32 to vector<16x64xf32>
    %c0_6 = arith.constant 0 : index
    %c0_7 = arith.constant 0 : index
    %7 = vector.load %arg5[%c0_6, %c0_7] : memref<18x64xf32, #tpu.memory_space<vmem>>, vector<16x64xf32>
    %8 = arith.truncf %7 : vector<16x64xf32> to vector<16x64xbf16>
    %c0_8 = arith.constant 0 : index
    %c0_9 = arith.constant 0 : index
    %c0_10 = arith.constant 0 : index
    %9 = vector.load %arg2[%c0_8, %c0_9, %c0_10] : memref<3x64x64xbf16, #tpu.memory_space<vmem>>, vector<1x64x64xbf16>
    %10 = vector.shape_cast %9 : vector<1x64x64xbf16> to vector<64x64xbf16>
    %cst_11 = arith.constant dense<0.000000e+00> : vector<16x64xf32>
    %11 = tpu.matmul %8, %10, %cst_11 {dimension_numbers = #tpu.dot_dimension_numbers<[1], [0], [0], [1], [0, 0, 1, 1], [], []>} : vector<16x64xbf16>, vector<64x64xbf16>, vector<16x64xf32> -> vector<16x64xf32>
    %12 = arith.addf %6, %11 : vector<16x64xf32>
    %c1_12 = arith.constant 1 : index
    %c0_13 = arith.constant 0 : index
    %13 = vector.load %arg5[%c1_12, %c0_13] : memref<18x64xf32, #tpu.memory_space<vmem>>, vector<16x64xf32>
    %14 = arith.truncf %13 : vector<16x64xf32> to vector<16x64xbf16>
    %c1_14 = arith.constant 1 : index
    %c0_15 = arith.constant 0 : index
    %c0_16 = arith.constant 0 : index
    %15 = vector.load %arg2[%c1_14, %c0_15, %c0_16] : memref<3x64x64xbf16, #tpu.memory_space<vmem>>, vector<1x64x64xbf16>
    %16 = vector.shape_cast %15 : vector<1x64x64xbf16> to vector<64x64xbf16>
    %cst_17 = arith.constant dense<0.000000e+00> : vector<16x64xf32>
    %17 = tpu.matmul %14, %16, %cst_17 {dimension_numbers = #tpu.dot_dimension_numbers<[1], [0], [0], [1], [0, 0, 1, 1], [], []>} : vector<16x64xbf16>, vector<64x64xbf16>, vector<16x64xf32> -> vector<16x64xf32>
    %18 = arith.addf %12, %17 : vector<16x64xf32>
    %c2 = arith.constant 2 : index
    %c0_18 = arith.constant 0 : index
    %19 = vector.load %arg5[%c2, %c0_18] : memref<18x64xf32, #tpu.memory_space<vmem>>, vector<16x64xf32>
    %20 = arith.truncf %19 : vector<16x64xf32> to vector<16x64xbf16>
    %c2_19 = arith.constant 2 : index
    %c0_20 = arith.constant 0 : index
    %c0_21 = arith.constant 0 : index
    %21 = vector.load %arg2[%c2_19, %c0_20, %c0_21] : memref<3x64x64xbf16, #tpu.memory_space<vmem>>, vector<1x64x64xbf16>
    %22 = vector.shape_cast %21 : vector<1x64x64xbf16> to vector<64x64xbf16>
    %cst_22 = arith.constant dense<0.000000e+00> : vector<16x64xf32>
    %23 = tpu.matmul %20, %22, %cst_22 {dimension_numbers = #tpu.dot_dimension_numbers<[1], [0], [0], [1], [0, 0, 1, 1], [], []>} : vector<16x64xbf16>, vector<64x64xbf16>, vector<16x64xf32> -> vector<16x64xf32>
    %24 = arith.addf %18, %23 : vector<16x64xf32>
    %25 = arith.truncf %24 : vector<16x64xf32> to vector<16x64xbf16>
    %c0_23 = arith.constant 0 : index
    %c0_24 = arith.constant 0 : index
    %26 = vector.load %arg3[%c0_23, %c0_24] : memref<64x128xbf16, #tpu.memory_space<vmem>>, vector<64x128xbf16>
    %cst_25 = arith.constant dense<0.000000e+00> : vector<16x128xf32>
    %27 = tpu.matmul %25, %26, %cst_25 {dimension_numbers = #tpu.dot_dimension_numbers<[1], [0], [0], [1], [0, 0, 1, 1], [], []>} : vector<16x64xbf16>, vector<64x128xbf16>, vector<16x128xf32> -> vector<16x128xf32>
    %28 = arith.truncf %27 : vector<16x128xf32> to vector<16x128xbf16>
    %c0_26 = arith.constant 0 : index
    %c0_27 = arith.constant 0 : index
    %c0_28 = arith.constant 0 : index
    %29 = vector.load %arg4[%c0_26, %c0_27, %c0_28] : memref<1x16x128xbf16, #tpu.memory_space<vmem>>, vector<1x16x128xbf16>
    %30 = vector.shape_cast %29 : vector<1x16x128xbf16> to vector<16x128xbf16>
    %31 = vector.shape_cast %28 : vector<16x128xbf16> to vector<1x16x128xbf16>
    tpu.vector_store %arg4[%c0_26, %c0_27, %c0_28], %31 {strides = array<i32>} : memref<1x16x128xbf16, #tpu.memory_space<vmem>>, vector<1x16x128xbf16>,
    return
  }
  func.func @transform_0(%arg0: i32) -> (i32, i32, i32) {
    %c0_i32 = arith.constant 0 : i32
    %c0_i32_0 = arith.constant 0 : i32
    %c0_i32_1 = arith.constant 0 : i32
    return %arg0, %c0_i32, %c0_i32_0 : i32, i32, i32
  }
  func.func @transform_1(%arg0: i32) -> (i32, i32, i32) {
    %c0_i32 = arith.constant 0 : i32
    %c0_i32_0 = arith.constant 0 : i32
    %c0_i32_1 = arith.constant 0 : i32
    %c0_i32_2 = arith.constant 0 : i32
    return %c0_i32, %c0_i32_0, %c0_i32_1 : i32, i32, i32
  }
  func.func @transform_2(%arg0: i32) -> (i32, i32) {
    %c0_i32 = arith.constant 0 : i32
    %c0_i32_0 = arith.constant 0 : i32
    %c0_i32_1 = arith.constant 0 : i32
    return %c0_i32, %c0_i32_0 : i32, i32
  }
  func.func @transform_3(%arg0: i32) -> (i32, i32, i32) {
    %c0_i32 = arith.constant 0 : i32
    %c0_i32_0 = arith.constant 0 : i32
    %c0_i32_1 = arith.constant 0 : i32
    return %arg0, %c0_i32, %c0_i32_0 : i32, i32, i32
  }
}

</mosaic_0001>

<bundles_post_ra>
// kernel: tpu_custom_call.1
= control target key start
LH: loop header
LB: loop body
LE: loop exit
PB: predicated region body
PF: predicated region fallthrough
CT: control target
= control target key end

     0   :  { %8 = vsyncpa [#allocation4], 0  ;;  %s1290_s0 = inlined_call_operand.hbm [shape: bf16[2,16,64], index: 0, kind: input, shape index: {}]   ;;  %s1291_s1 = inlined_call_operand.hbm [shape: bf16[3,64,64], index: 1, kind: input, shape index: {}]   ;;  %s1292_s2 = inlined_call_operand.hbm [shape: bf16[64,128], index: 2, kind: input, shape index: {}]   ;;  %s1293_s3 = inlined_call_operand.hbm [shape: bf16[2,16,128], index: 3, kind: output, shape index: {}]  }
   0x1   :  { %10 = vsyncpa [#allocation4 + $0x1], 0 }
   0x2   :  { %11 = vsyncpa [#allocation7], 0 }
   0x3   :  { %12 = vsyncpa [#allocation5], 0 }
   0x4   :  { %14 = vsyncpa [#allocation5 + $0x1], 0  ;;  %s1054_s12 = smov 0   ;;  %s1056_s13 = smov 0  }
   0x5   :  { %s1058_s14 = smov 0   ;;  %s1060_s15 = smov 0  }
   0x6 LB: > { %s1075_s16 = sadd.s32 4294967295, %s1022_s15   ;;  %s664_s17 = sadd.s32 4294967294, %s1022_s15   ;;  %s1022_s15 = sphi %s1060_s15, %s1314_s15   ;;  %s1018_s14 = sphi %s1058_s14, %s1313_s14   ;;  %s1014_s13 = sphi %s1056_s13, %s1312_s13   ;;  %s1010_s12 = sphi %s1054_s12, %s1311_s12  }
   0x7   : > { %p40_p0 = scmp.ne.s32.totalorder %s1014_s13, %s1010_s12  ;;  %p1294_p1 = scmp.eq.s32.totalorder %s1075_s16, 0 }
   0x8   : > { %p106_p2 = scmp.eq.s32.totalorder %s1075_s16, 1  ;;  %p112_p3 = scmp.eq.s32.totalorder %s664_s17, 1 }
   0x9   : > { %p1084_p4 = por %p1294_p1, %p40_p0  ;;  %p665_p5 = scmp.ge.s32.totalorder %s1022_s15, 1 }
   0xa   : > { %p1089_p6 = por %p112_p3, %p40_p0  ;;  %p119_p7 = scmp.lt.s32.totalorder %s1022_s15, 3 }
   0xb   : > { %s1298_s18 = scalar_select %p1084_p4, 1, 0 }
   0xc   : > { %s1299_s19 = scalar_select %p1089_p6, 1, 0 }
   0xd   : > { %p1094_p8 = pnand %p665_p5, %p119_p7  ;;  %s1024_s21 = smov [#allocation6]  }
   0xe   : > { %s131_s22 = sshll.u32 %s1024_s21, 4  ;;  %s1025_s24 = smov [#allocation8]   ;;  %s132_s22 = int_to_ptr.vmem [resolvable:$true] %s131_s22 }
   0xf   : > { %s1300_s20 = scalar_select %p1094_p8, 1, 0 }
  0x10   : > { %p797_p9 = pneg %p1094_p8  ;;  %s144_s25 = sshll.u32 %s1025_s24, 4  ;;  %s145_s25 = int_to_ptr.vmem [resolvable:$true] %s144_s25 }
  0x11   : > { %s885_s26 = scalar_lea.vmem %s132_s22, 1536  ;;  %p893_p5 = scmp.lt.s32.totalorder %s132_s22, %s132_s22 }
  0x12   : > { %p1103_p11 = pnand %p797_p9, %p1294_p1  ;;  %p886_p13 = scmp.ne.s32.totalorder %s132_s22, %s885_s26 }
  0x13   : > { %p894_p7 = scmp.lt.s32.totalorder %s885_s26, %s885_s26 }
  0x14   : > { %p876_p12 = pneg %p1103_p11 }
  0x15   : > { %p895_p10 = por %p894_p7, %p893_p5 }
  0x16   : > { %p888_p0 = pnand %p886_p13, %p876_p12 }
  0x18   : > { %p889_p3 = pneg %p888_p0 }
  0x1a   : > { %p896_p9 = pnand %p895_p10, %p889_p3 }
  0x1c   : > { %899 = shalt.err (!%p896_p9)
}
  0x1d   : > { %s1026_s27 = smov 64   ;;  %s1027_s28 = smov 4  }
  0x1e   : > { %800 = dma.hbm_to_vmem [thread:$0]  (!%p1103_p11), %s1291_s1, 1536, %s132_s22, [#allocation7], %s1026_s27, %s1026_s27, %s1027_s28  }
  0x1f   : > { %s911_s4 = scalar_lea.vmem %s145_s25, 512  ;;  %p919_p10 = scmp.lt.s32.totalorder %s145_s25, %s145_s25 }
  0x20   : > { %p912_p13 = scmp.ne.s32.totalorder %s145_s25, %s911_s4  ;;  %p920_p3 = scmp.lt.s32.totalorder %s911_s4, %s911_s4 }
  0x22   : > { %p914_p0 = pnand %p912_p13, %p876_p12  ;;  %p921_p7 = por %p920_p3, %p919_p10 }
  0x24   : > { %p915_p5 = pneg %p914_p0 }
  0x26   : > { %p922_p9 = pnand %p921_p7, %p915_p5 }
  0x28   : > { %925 = shalt.err (!%p922_p9)
}
  0x29   : > { %803 = dma.hbm_to_vmem [thread:$0]  (!%p1103_p11), %s1292_s2, 512, %s145_s25, [#allocation7], %s1026_s27, %s1026_s27, %s1027_s28  }
  0x2a   : > { %s1132_s7 = sadd.s32 1, %s1022_s15   ;;  %s27_s8 = sadd.s32 1, %s1018_s14 }
  0x2b   : > { %s24_s9 = ssub.s32 %s1022_s15, %s1132_s7  ;;  %p34_p12 = scmp.ne.s32.totalorder %s1018_s14, %s1014_s13 }
  0x2c   : > { %p25_p13 = scmp.eq.s32.totalorder %s24_s9, 0  ;;  %p35_p0 = scmp.eq.s32.totalorder %s1022_s15, 0 }
  0x2d   : > { %p1142_p5 = por %p106_p2, %p34_p12  ;;  %p814_p10 = scmp.lt.s32.totalorder %s1022_s15, 2 }
  0x2e   : > { %s1148_s11 = scalar_select %p25_p13, %s1018_s14, %s27_s8  }
  0x2f   : > { %s1302_s10 = scalar_select %p1142_p5, 1, 0 }
  0x30   : > { %p36_p3 = por %p35_p0, %p34_p12  ;;  %s158_s17 = sand.u32 1, %s1018_s14  }
  0x31   : > { %s669_s21 = sshll.u32 %s158_s17, 3  ;;  %s704_s22 = sshll.u32 %s1022_s15, 7 }
  0x32   : > { %s1155_s25 = scalar_lea.hbm %s1290_s0, %s704_s22  ;;  %s162_s26 = scalar_lea.vmem [#allocation3], %s669_s21 }
  0x33   : > { %s169_s29 = sshll.u32 %s162_s26, 4  ;;  %p1159_p2 = pnand %p814_p10, %p36_p3  ;;  %s1157_s29 = int_to_ptr.vmem [resolvable:$true] %s169_s29 }
  0x34   : > { %s1163_s4 = scalar_lea.sflag [#allocation4], %s158_s17  ;;  %s926_s5 = scalar_lea.hbm %s1155_s25, 128 }
  0x35   : > { %p927_p11 = scmp.ne.s32.totalorder %s1155_s25, %s926_s5  ;;  %p928_p7 = pneg %p1159_p2 }
  0x36   : > { %s931_s9 = scalar_lea.hbm %s1290_s0, 256  ;;  %p932_p13 = scmp.lt.s32.totalorder %s1155_s25, %s1290_s0 }
  0x37   : > { %p929_p9 = pnand %p928_p7, %p927_p11  ;;  %p933_p0 = scmp.lt.s32.totalorder %s931_s9, %s926_s5 }
  0x39   : > { %p930_p12 = pneg %p929_p9  ;;  %p934_p10 = por %p933_p0, %p932_p13 }
  0x3b   : > { %p935_p3 = pnand %p934_p10, %p930_p12 }
  0x3d   : > { %938 = shalt.err (!%p935_p3)
}
  0x3e   : > { %s939_s17 = scalar_lea.vmem %s1157_s29, 128  ;;  %s1028_s23 = smov [#allocation3]  }
  0x3f   : > { %p940_p1 = scmp.ne.s32.totalorder %s1157_s29, %s939_s17  ;;  %s944_s24 = sshll.u32 %s1028_s23, 4  ;;  %s945_s24 = int_to_ptr.vmem [resolvable:$false] %s944_s24 }
  0x40   : > { %s946_s26 = scalar_lea.vmem %s945_s24, 256  ;;  %p947_p9 = scmp.lt.s32.totalorder %s1157_s29, %s945_s24 }
  0x41   : > { %p942_p6 = pnand %p940_p1, %p928_p7  ;;  %p948_p5 = scmp.lt.s32.totalorder %s946_s26, %s939_s17 }
  0x43   : > { %p943_p11 = pneg %p942_p6  ;;  %p949_p4 = por %p948_p5, %p947_p9 }
  0x45   : > { %p950_p8 = pnand %p949_p4, %p943_p11 }
  0x47   : > { %953 = shalt.err (!%p950_p8)
}
  0x48   : > { %807 = dma.hbm_to_vmem [thread:$0]  (!%p1159_p2), %s1155_s25, 128, %s1157_s29, %s1163_s4, %s1026_s27, %s1026_s27, %s1027_s28  }
  0x49   : > { %p1304_p1 = scmp.ne.s32.totalorder %s1300_s20, 0 }
  0x4a   : > { %s1190_s5 = sand.u32 (!%p1304_p1), 1, %s1014_s13   ;;  %p1305_p4 = scmp.ne.s32.totalorder (!%p1304_p1), %s1298_s18, 0 }
  0x4b   : > { %181 = sbr.rel (%p1304_p1) target bundleno = 532 (0x214), region = 32  ;;  %s673_s6 = sshll.u32 (!%p1304_p1), %s1190_s5, 3 }
  0x4c   : > { %s184_s8 = scalar_lea.sflag (!%p1304_p1), [#allocation4], %s1190_s5  ;;  %s187_s30 = scalar_lea.vmem (!%p1304_p1), [#allocation3], %s673_s6 }
  0x50   : > { %997 = dma.done.wait (%p1305_p4), %s184_s8, 128  }
  0x51   : > { %999 = vsyncadd (%p1305_p4), %s184_s8, 4294967168  ;;  %p1306_p6 = scmp.eq.s32.totalorder %s1075_s16, 0 }
  0x53   : > { %1001 = dma.done.wait (%p1306_p6), [#allocation7], 2048   ;;  %p1307_p8 = pmov %p1306_p6 }
  0x54   : > { %vm219_vm0 = vcmask 523264   ;;  %vm222_vm1 = vcmask 517120   ;;  %v1029_v0 = vmov 0.0   ;;  %vm1030_vm2 = vmmov 0   ;;  %v858_v1 = vld [vmem:[#allocation6 + $0x38] sm:$0xff]   ;;  %v860_v3 = vld [vmem:[#allocation6 + $0x30] sm:$0xff]  }
  0x55   : > { %1003 = vsyncadd (%p1307_p8), [#allocation7], 4294965248  ;;  %737 = vmatprep.subr.bf16.mxu0 %v1029_v0  ;;  %749 = vmatprep.subr.bf16.mxu1 %v1029_v0  ;;  %220 = vst.msk [vmem:[#allocation2] sm:$0xff] %vm219_vm0, %v1029_v0  ;;  %v859_v2 = vld [vmem:[#allocation6 + $0x18] sm:$0xff]   ;;  %v861_v4 = vld [vmem:[#allocation6 + $0x10] sm:$0xff]   ;;  %s217_s18 = scalar_lea.vmem [#allocation9], %s673_s6 }
  0x56   : > { %221 = vst.msk [vmem:[#allocation2 + $0x8] sm:$0xff] %vm219_vm0, %v1029_v0  ;;  %745 = vmatprep.mubr.msk.bf16.mxu0 %vm1030_vm2, %v1029_v0  ;;  %757 = vmatprep.mubr.msk.bf16.mxu1 %vm1030_vm2, %v1029_v0  ;;  %v862_v5 = vld [vmem:[#allocation6 + $0x28] sm:$0xff]   ;;  %v709_v7 = vld [vmem:[%s187_s30] sm:$0xff]   ;;  %v864_v10 = vld [vmem:[#allocation6 + $0x20] sm:$0xff]   ;;  %s572_s20 = sshll.u32 %s217_s18, 4  ;;  %s707_s27 = sshll.u32 %s1075_s16, 7  ;;  %s1242_s20 = int_to_ptr.vmem [resolvable:$true] %s572_s20 }
  0x57   : > { %223 = vst.msk [vmem:[#allocation2 + $0x10] sm:$0x3] %vm222_vm1, %v1029_v0  ;;  %738 = vmatpush3.bf16.msra.mxu0 %v858_v1  ;;  %750 = vmatpush3.bf16.msra.mxu1 %v859_v2  ;;  %v863_v6 = vld [vmem:[#allocation6 + $0x8] sm:$0xff]   ;;  %v710_v8 = vunpack.c.l.bf16 %v709_v7  ;;  %v711_v9 = vunpack.c.h.bf16 %v709_v7  ;;  %v865_v11 = vld [vmem:[#allocation6] sm:$0xff]   ;;  %v866_v12 = vld [vmem:[#allocation6 + $0x58] sm:$0xff]   ;;  %s1247_s29 = scalar_lea.hbm %s1293_s3, %s707_s27  ;;  %s559_s4 = scalar_lea.sflag [#allocation5], %s1190_s5 }
  0x58   : > { %739 = vmatprep.subr.bf16.mxu0 %v1029_v0  ;;  %751 = vmatprep.subr.bf16.mxu1 %v1029_v0  ;;  %v867_v19 = vld [vmem:[#allocation6 + $0x50] sm:$0xff]   ;;  %v868_v20 = vld [vmem:[#allocation6 + $0x48] sm:$0xff]   ;;  %v869_v21 = vld [vmem:[#allocation6 + $0x40] sm:$0xff]   ;;  %s954_s9 = scalar_lea.vmem %s1242_s20, 128  ;;  %p1308_p2 = scmp.ne.s32.totalorder %s1302_s10, 0 }
  0x59   : > { %228 = vst.msk [vmem:[#allocation2 + $0x1] sm:$0xff] %vm219_vm0, %v710_v8  ;;  %229 = vst.msk [vmem:[#allocation2 + $0x9] sm:$0xff] %vm219_vm0, %v711_v9  ;;  %v870_v25 = vld [vmem:[#allocation8 + $0x18] sm:$0xff]   ;;  %v871_v26 = vld [vmem:[#allocation8 + $0x10] sm:$0xff]   ;;  %p955_p5 = scmp.ne.s32.totalorder %s1242_s20, %s954_s9  ;;  %s1031_s16 = smov [#allocation9]  }
  0x5a   : > { %v872_v27 = vld [vmem:[#allocation8 + $0x8] sm:$0xff]   ;;  %v873_v28 = vld [vmem:[#allocation8] sm:$0xff]   ;;  %s958_s21 = sshll.u32 %s1031_s16, 4  ;;  %s959_s21 = int_to_ptr.vmem [resolvable:$false] %s958_s21 }
  0x5b   : > { %740 = vmatpush3.bf16.msra.mxu0 %v860_v3  ;;  %752 = vmatpush3.bf16.msra.mxu1 %v861_v4  ;;  %p956_p7 = pnand %p955_p5, %p1308_p2  ;;  %s960_s22 = scalar_lea.vmem %s959_s21, 256 }
  0x5c   : > { %741 = vmatprep.subr.bf16.mxu0 %v1029_v0  ;;  %753 = vmatprep.subr.bf16.mxu1 %v1029_v0  ;;  %p961_p13 = scmp.lt.s32.totalorder %s1242_s20, %s959_s21  ;;  %p962_p0 = scmp.lt.s32.totalorder %s960_s22, %s954_s9 }
  0x5d   : > { %p957_p12 = pneg %p956_p7 }
  0x5e   : > { %p963_p10 = por %p962_p0, %p961_p13 }
  0x5f   : > { %742 = vmatpush3.bf16.msra.mxu0 %v862_v5  ;;  %754 = vmatpush3.bf16.msra.mxu1 %v863_v6 }
  0x60   : > { %743 = vmatprep.subr.bf16.mxu0 %v1029_v0  ;;  %755 = vmatprep.subr.bf16.mxu1 %v1029_v0  ;;  %v241_v13 = vld [vmem:[#allocation2 + $0x1] sm:$0xff]  ;;  %v242_v14 = vld [vmem:[#allocation2 + $0x9] sm:$0xff]  ;;  %p964_p3 = pnand %p963_p10, %p957_p12 }
  0x61   : > { %v230_v15 = vld [vmem:[#allocation2] sm:$0xff]  ;;  %v243_v16 = vpack.c.bf16 %v242_v14, %v241_v13  ;;  %v231_v17 = vld [vmem:[#allocation2 + $0x8] sm:$0xff] }
  0x62   : > { %v232_v18 = vpack.c.bf16 %v231_v17, %v230_v15  ;;  %v389_v22 = vld [vmem:[#allocation2 + $0x2] sm:$0xff]  ;;  %v390_v23 = vld [vmem:[#allocation2 + $0xa] sm:$0xff] }
  0x63   : > { %744 = vmatpush3.bf16.msra.mxu0 %v864_v10  ;;  %756 = vmatpush3.bf16.msra.mxu1 %v865_v11  ;;  %v391_v24 = vpack.c.bf16 %v390_v23, %v389_v22 }
  0x64   : > { %761 = vmatprep.subr.bf16.mxu0 %v1029_v0  ;;  %773 = vmatprep.subr.bf16.mxu1 %v1029_v0 }
  0x66   : > { %746 = vmatmul.mubr.msk.bf16.vlgmr.msra.gmra.mxu0 %vm219_vm0, %v243_v16  ;;  %758 = vmatmul.mubr.msk.bf16.vlgmr.msra.gmra.mxu1 %vm219_vm0, %v232_v18 }
  0x67   : > { %762 = vmatpush3.bf16.msra.mxu0 %v866_v12  ;;  %769 = vmatprep.mubr.msk.bf16.mxu0 %vm1030_vm2, %v1029_v0 }
  0x68   : > { %763 = vmatprep.subr.bf16.mxu0 %v1029_v0  ;;  %781 = vmatprep.mubr.msk.bf16.mxu1 %vm1030_vm2, %v1029_v0 }
  0x69   : > { %774 = vmatpush3.bf16.msra.mxu1 %v870_v25 }
  0x6a   : > { %775 = vmatprep.subr.bf16.mxu1 %v1029_v0 }
  0x6b   : > { %764 = vmatpush3.bf16.msra.mxu0 %v867_v19 }
  0x6c   : > { %765 = vmatprep.subr.bf16.mxu0 %v1029_v0 }
  0x6d   : > { %776 = vmatpush3.bf16.msra.mxu1 %v871_v26 }
  0x6e   : > { %777 = vmatprep.subr.bf16.mxu1 %v1029_v0 }
  0x6f   : > { %766 = vmatpush3.bf16.msra.mxu0 %v868_v20 }
  0x70   : > { %767 = vmatprep.subr.bf16.mxu0 %v1029_v0 }
  0x71   : > { %778 = vmatpush3.bf16.msra.mxu1 %v872_v27 }
  0x72   : > { %779 = vmatprep.subr.bf16.mxu1 %v1029_v0 }
  0x73   : > { %768 = vmatpush3.bf16.msra.mxu0 %v869_v21 }
  0x75   : > { %780 = vmatpush3.bf16.msra.mxu1 %v873_v28 }
  0x76   : > { %770 = vmatmul.mubr.msk.bf16.vlgmr.msra.gmra.mxu0 %vm219_vm0, %v391_v24 }
 0x126   : > { %v314_v29 = vpop.f32.mrf.mxu0  ;;  %v382_v30 = vpop.f32.mrf.mxu1 }
 0x127   : > { %v383_v39 = vadd.f32 %v382_v30, %v314_v29 }
 0x128   : > { %v747_v31 = vpop.f32.mrf.mxu0  ;;  %v759_v32 = vpop.f32.mrf.mxu1 }
 0x12a   : > { %v317_v33 = vpop.f32.mrf.mxu0  ;;  %v385_v34 = vpop.f32.mrf.mxu1 }
 0x12b   : > { %v386_v40 = vadd.f32 %v385_v34, %v317_v33 }
 0x12c   : > { %v748_v35 = vpop.f32.mrf.mxu0  ;;  %v760_v36 = vpop.f32.mrf.mxu1 }
 0x136   : > { %v462_v37 = vpop.f32.mrf.mxu0 }
 0x137   : > { %v469_v42 = vadd.f32 %v462_v37, %v383_v39 }
 0x138   : > { %v771_v38 = vpop.f32.mrf.mxu0 }
 0x13a   : > { %v465_v41 = vpop.f32.mrf.mxu0 }
 0x13b   : > { %v470_v43 = vadd.f32 %v465_v41, %v386_v40 }
 0x13c   : > { %v772_v44 = vpop.f32.mrf.mxu0 }
 0x13d   : > { %v471_v45 = vpack.c.bf16 %v470_v43, %v469_v42 }
 0x13f   : > { %782 = vmatmul.mubr.msk.bf16.vlgmr.msra.gmra.mxu1 %vm219_vm0, %v471_v45 }
 0x1ff   : > { %v541_v46 = vpop.f32.mrf.mxu1 }
 0x201   : > { %v783_v47 = vpop.f32.mrf.mxu1 }
 0x203   : > { %v544_v48 = vpop.f32.mrf.mxu1 }
 0x204   : > { %v715_v49 = vpack.c.bf16 %v544_v48, %v541_v46 }
 0x205   : > { %v784_v50 = vpop.f32.mrf.mxu1 }
 0x206   : > { %716 = vst [vmem:[%s217_s18] sm:$0xff] %v715_v49  }
 0x207   : > { %967 = shalt.err (!%p964_p3)
}
 0x208   : > { %s968_s17 = scalar_lea.hbm %s1247_s29, 128  ;;  %s972_s26 = scalar_lea.hbm %s1293_s3, 256 }
 0x209   : > { %p969_p11 = scmp.ne.s32.totalorder %s1247_s29, %s968_s17  ;;  %p973_p4 = scmp.lt.s32.totalorder %s1247_s29, %s1293_s3 }
 0x20a   : > { %p974_p6 = scmp.lt.s32.totalorder %s972_s26, %s968_s17 }
 0x20b   : > { %p970_p9 = pnand %p969_p11, %p1308_p2 }
 0x20c   : > { %p975_p8 = por %p974_p6, %p973_p4 }
 0x20d   : > { %p971_p1 = pneg %p970_p9 }
 0x20f   : > { %p976_p5 = pnand %p975_p8, %p971_p1 }
 0x211   : > { %979 = shalt.err (!%p976_p5)
}
 0x212   : > { %s1032_s30 = smov 64   ;;  %s1033_s18 = smov 4  }
 0x213   : > { %795 = dma.vmem_to_hbm [thread:$0]  (%p1308_p2), %s1242_s20, 128, %s1247_s29, %s559_s4, %s1032_s30, %s1032_s30, %s1033_s18  }
 0x214 PF: > { %s587_s27 = sand.u32 1, %s1010_s12   ;;  %p1309_p7 = scmp.ne.s32.totalorder %s1299_s19, 0 }
 0x215   : > { %p1310_p12 = scmp.ge.s32.totalorder %s1022_s15, 2  ;;  %s588_s28 = scalar_lea.sflag [#allocation5], %s587_s27 }
 0x217   : > { %p809_p13 = pnand %p1310_p12, %p1309_p7 }
 0x219   : > { %p810_p0 = pneg %p809_p13 }
 0x21b   : > { %1005 = dma.done.wait (%p810_p0), %s588_s28, 128  }
 0x21c   : > { %1007 = vsyncadd (%p810_p0), %s588_s28, 4294967168  ;;  %p17_p10 = scmp.ge.s32.totalorder %s1132_s7, 4   ;;  %s1311_s12 = smov %s1014_s13 }
 0x21d   : > { %s1312_s13 = smov %s1018_s14  ;;  %s1313_s14 = smov %s1148_s11 }
 0x21e   : > { %s1314_s15 = smov %s1132_s7  ;;  %19 = sbr.rel (!%p17_p10) target bundleno = 6 (0x6), region = 87 }
 0x223   :  { %593 = vsyncpa [#allocation4], 1 }
 0x224   :  { %595 = vsyncpa [#allocation4 + $0x1], 1 }
 0x225   :  { %596 = vsyncpa [#allocation7], 1 }
 0x226   :  { %597 = vsyncpa [#allocation5], 1 }
 0x227   :  { %599 = vsyncpa [#allocation5 + $0x1], 1 }

</bundles_post_ra>
